<compile_context>
chip_gen: v7x
topology: tpu7x:2x2x1
jax: 0.10.0
libtpu: 0.0.40
codegen_flags: <defaults>
</compile_context>

<pallas_src>
import math
import numpy as np
import jax
import jax.numpy as jnp
from jax.experimental import pallas as pl
from jax.experimental.pallas import tpu as pltpu


# ----------------------------- parameter setup (glue, plain numpy) ------------

def _lcm(a, b):
    return abs(a * b) // math.gcd(a, b)


def _round_up(x, m):
    return -(-x // m) * m


def _cdiv(a, b):
    return -(-a // b)


def _get_num_lr_output_samples(input_num_samp, samp_rate_in, samp_rate_out):
    samp_rate_in = int(samp_rate_in)
    samp_rate_out = int(samp_rate_out)
    tick_freq = _lcm(samp_rate_in, samp_rate_out)
    ticks_per_input_period = tick_freq // samp_rate_in
    interval_length_in_ticks = input_num_samp * ticks_per_input_period
    if interval_length_in_ticks <= 0:
        return 0
    ticks_per_output_period = tick_freq // samp_rate_out
    last_output_samp = interval_length_in_ticks // ticks_per_output_period
    if last_output_samp * ticks_per_output_period == interval_length_in_ticks:
        last_output_samp -= 1
    return last_output_samp + 1


def _lr_indices_and_weights(orig_freq, new_freq, lowpass_filter_width=6):
    """Replicates torchaudio.compliance.kaldi._get_LR_indices_and_weights."""
    min_freq = min(orig_freq, new_freq)
    lowpass_cutoff = 0.99 * 0.5 * min_freq
    assert lowpass_cutoff * 2 <= min_freq
    base_freq = math.gcd(int(orig_freq), int(new_freq))
    input_spu = int(orig_freq) // base_freq      # conv stride Q
    output_spu = int(new_freq) // base_freq      # number of phases P
    window_width = lowpass_filter_width / (2.0 * lowpass_cutoff)

    output_t = np.arange(output_spu, dtype=np.float64) / float(new_freq)
    min_t = output_t - window_width
    max_t = output_t + window_width
    min_input_index = np.ceil(min_t * orig_freq)
    max_input_index = np.floor(max_t * orig_freq)
    num_indices = (max_input_index - min_input_index + 1).astype(np.int64)
    window_size = int(num_indices.max())

    j = np.arange(window_size, dtype=np.float64)[None, :]
    input_index = min_input_index[:, None] + j
    delta_t = input_index / float(orig_freq) - output_t[:, None]

    weights = np.zeros_like(delta_t)
    inside = np.abs(delta_t) < window_width
    weights[inside] = 0.5 * (1.0 + np.cos(
        2.0 * math.pi * lowpass_cutoff / lowpass_filter_width * delta_t[inside]))
    t_zero = delta_t == 0.0
    t_nz = ~t_zero
    weights[t_nz] *= np.sin(2.0 * math.pi * lowpass_cutoff * delta_t[t_nz]) / (
        math.pi * delta_t[t_nz])
    weights[t_zero] *= 2.0 * lowpass_cutoff
    weights /= float(orig_freq)

    return (min_input_index.astype(np.int64), weights.astype(np.float32),
            input_spu, output_spu, window_size)


def _resample_plan(wave_len, orig_freq, new_freq, lowpass_filter_width=6):
    """All static (compile-time) bookkeeping for the kernel."""
    first_idx, weights, Q, P, W = _lr_indices_and_weights(
        orig_freq, new_freq, lowpass_filter_width)
    tot_out = _get_num_lr_output_samples(wave_len, orig_freq, new_freq)
    assert tot_out > 0
    U = _cdiv(tot_out, P)                         # units per phase

    pad_left = int(max(0, -int(first_idx.min())))
    base = first_idx.astype(np.int64) + pad_left  # (P,), all >= 0
    taps = base[:, None] + np.arange(W, dtype=np.int64)[None, :]   # flat tap offsets
    qoff = taps // Q                              # polyphase column shift per tap
    rmod = taps % Q                               # polyphase row per tap
    max_q = int(qoff.max())
    HALO = _round_up(max_q, 128) if max_q > 0 else 0

    # --- segment / tile geometry ---------------------------------------------
    # Split the U unit-columns into 8 sublane-segments of SEG lanes each.
    seg128 = _round_up(_cdiv(U, 8), 128)
    if seg128 >= 4 * 2048:
        # big input: >=4 even tiles (v7x megacore balance) with >=2048-lane tiles
        nt = max(4, _cdiv(seg128, 8192))
        if nt % 2:
            nt += 1
        TILE = _round_up(_cdiv(seg128, nt), 128)
        num_tiles = _cdiv(seg128, TILE)
        if num_tiles > 1 and num_tiles % 2:
            num_tiles += 1                        # even count; extra tile is pure padding
    else:
        TILE = seg128
        num_tiles = 1
    SEG = num_tiles * TILE                        # final columns per segment

    # register-resident sub-tile width: the whole W-tap chain stays in vregs
    sub_pref = 512 if Q <= 3 else (256 if Q <= 6 else 128)
    SUB = 128
    for cand in (512, 256, 128):
        if cand <= sub_pref and TILE % cand == 0:
            SUB = cand
            break

    K_cols = SEG + HALO                           # stored columns per segment (incl. halo)
    K_total = 8 * SEG + HALO                      # polyphase columns covering all segments
    total_len = K_total * Q                       # padded waveform length

    # static correctness check (review): every tap of every *valid* output is in range,
    # so truncation of unread tail samples (pad_right < 0 case) is safe.
    max_tap_flat = int(base.max()) + (U - 1) * Q + (W - 1)
    assert max_tap_flat < total_len, (max_tap_flat, total_len)

    return dict(weights=weights, Q=Q, P=P, W=W, tot_out=tot_out, U=U,
                pad_left=pad_left, qoff=qoff, rmod=rmod, max_q=max_q,
                HALO=HALO, SEG=SEG, TILE=TILE, SUB=SUB, num_tiles=num_tiles,
                K_cols=K_cols, K_total=K_total, total_len=total_len)


# ----------------------------- Pallas kernel (hot path) -----------------------

def _make_resample_kernel(plan, C):
    """Kernel with the (static) tap offsets and weights baked in as immediates."""
    Q, P, W = plan["Q"], plan["P"], plan["W"]
    TILE, SUB, HALO = plan["TILE"], plan["SUB"], plan["HALO"]
    qoff = [[int(v) for v in row] for row in plan["qoff"]]
    rmod = [[int(v) for v in row] for row in plan["rmod"]]
    wts = [[float(v) for v in row] for row in plan["weights"]]
    nsub = TILE // SUB

    # drop zero-weight taps at trace time
    live = [[(rmod[p][j], qoff[p][j], wts[p][j]) for j in range(W) if wts[p][j] != 0.0]
            for p in range(P)]
    used_r = sorted({r for taps_p in live for (r, _, _) in taps_p})
    # Hoisted-slab path only when the residue working set fits comfortably in vregs;
    # otherwise (large-Q fractional ratios) fall back to per-tap loads.
    use_slabs = len(used_r) <= 8
    slab_w = SUB + HALO

    def kernel(x_ref, o_ref):
        # x_ref: (Q, C, 8, K_cols) polyphase waveform, whole array resident in VMEM
        # o_ref: (P, C, 8, TILE)   output tile; segments on sublanes, units on lanes
        t = pl.program_id(0)
        tbase = pl.multiple_of(t * TILE, 128)
        for si in range(nsub):                    # static sub-tile loop
            sbase = tbase + si * SUB              # 128-aligned load/store base
            for c in range(C):                    # C is tiny (1-2): static unroll
                slabs = {}
                if use_slabs:
                    # one aligned, lane-dense load per residue, shared by all P phases
                    for r in used_r:
                        slabs[r] = x_ref[r, c, :, pl.ds(sbase, slab_w)]     # (8, SUB+HALO)
                for p in range(P):
                    acc = None
                    for (r, q, w) in live[p]:     # unrolled VPU tap loop
                        if use_slabs:
                            # static in-register slice: lane shift goes to XLU, no extra vld
                            xv = slabs[r][:, q:q + SUB] if HALO else slabs[r]
                        else:
                            xv = x_ref[r, c, :, pl.ds(sbase + q, SUB)]
                        term = xv * w             # scalar-immediate multiply
                        acc = term if acc is None else acc + term
                    if acc is None:               # degenerate all-zero filter row
                        acc = jnp.zeros((8, SUB), jnp.float32)
                    # single lane-dense store per (p, c, sub-tile)
                    o_ref[p, c, :, pl.ds(si * SUB, SUB)] = acc

    return kernel


def _apply_filters(x_seg, plan, C):
    P, Q = plan["P"], plan["Q"]
    SEG, TILE, num_tiles, K_cols = plan["SEG"], plan["TILE"], plan["num_tiles"], plan["K_cols"]
    kernel = _make_resample_kernel(plan, C)

    in_bytes = Q * C * 8 * K_cols * 4
    out_blk_bytes = P * C * 8 * TILE * 4
    vmem_limit = int(min(128 * 2**20,
                         max(24 * 2**20, in_bytes + 4 * out_blk_bytes + (4 << 20))))

    return pl.pallas_call(
        kernel,
        out_shape=jax.ShapeDtypeStruct((P, C, 8, SEG), jnp.float32),
        grid=(num_tiles,),
        in_specs=[
            # whole polyphase waveform placed in VMEM once, no double-buffering
            pl.BlockSpec(memory_space=pltpu.MemorySpace.VMEM),
        ],
        out_specs=pl.BlockSpec((P, C, 8, TILE), lambda t: (0, 0, 0, t)),
        compiler_params=pltpu.CompilerParams(
            dimension_semantics=("parallel",),    # U-tiles feed both TCs on v7x
            vmem_limit_bytes=vmem_limit),
    )(x_seg)


# ----------------------------- public wrapper ---------------------------------

def resample(waveform, orig_freq=16000, new_freq=16000, lowpass_filter_width=6):
    """Equivalent of torchaudio.transforms.Resample(orig_freq, new_freq)(waveform)."""
    C, wave_len = waveform.shape
    plan = _resample_plan(wave_len, orig_freq, new_freq, lowpass_filter_width)
    Q, P = plan["Q"], plan["P"]
    SEG, K_cols, K_total = plan["SEG"], plan["K_cols"], plan["K_total"]
    total_len, pad_left = plan["total_len"], plan["pad_left"]

    # zero-pad (kaldi's implicit zero extension)
    x = waveform.astype(jnp.float32)
    pad_right = total_len - pad_left - wave_len
    if pad_right >= 0:
        x_ext = jnp.pad(x, ((0, 0), (pad_left, pad_right)))
    else:
        # only samples no valid output ever reads are dropped (asserted in the plan)
        x_ext = jnp.pad(x, ((0, 0), (pad_left, 0)))[:, :total_len]

    # polyphase view with halo'd sublane segments:
    #   x_seg[r, c, s, m] = x_ext[c, (s*SEG + m)*Q + r]
    x_resh = x_ext.reshape(C, K_total, Q)
    segs = [x_resh[:, s * SEG: s * SEG + K_cols, :] for s in range(8)]
    x_seg = jnp.transpose(jnp.stack(segs, axis=1), (3, 0, 1, 2))   # (Q, C, 8, K_cols)

    out_seg = _apply_filters(x_seg, plan, C)                       # (P, C, 8, SEG)
    # output sample o = (s*SEG + m) * P + p
    if P == 1:
        out = out_seg[0].reshape(C, 8 * SEG)                       # pure reshape, no transpose
    else:
        out = jnp.transpose(out_seg, (1, 2, 3, 0)).reshape(C, 8 * SEG * P)
    out = out[:, :plan["tot_out"]]
    return out.astype(waveform.dtype)


# ----------------------------- pure numpy reference (sanity check) ------------

def _reference_resample(waveform_np, orig_freq, new_freq, lowpass_filter_width=6):
    """Direct kaldi formula: out[c, u*P + p] = sum_j w[p,j] * x[c, first_idx[p]+u*Q+j]."""
    first_idx, weights, Q, P, W = _lr_indices_and_weights(
        orig_freq, new_freq, lowpass_filter_width)
    C, T = waveform_np.shape
    tot_out = _get_num_lr_output_samples(T, orig_freq, new_freq)
    x = waveform_np.astype(np.float64)
    w = weights.astype(np.float64)
    out = np.zeros((C, tot_out), dtype=np.float64)
    for o in range(tot_out):
        u, p = o // P, o % P
        for j in range(W):
            idx = int(first_idx[p]) + u * Q + j
            if 0 <= idx < T:
                out[:, o] += w[p, j] * x[:, idx]
    return out.astype(np.float32)


if __name__ == "__main__":
    key = jax.random.PRNGKey(0)
    C, T = 2, 64
    waveform = jax.random.normal(key, (C, T), dtype=jnp.float32)

    # downsample 2x (Q=2, P=1) and upsample 2x (Q=1, P=2) exercise both glue paths
    for orig_freq, new_freq in ((16000.0, 8000.0), (8000.0, 16000.0)):
        out = resample(waveform, orig_freq, new_freq)
        out = jax.block_until_ready(out)
        ref = _reference_resample(np.asarray(waveform), orig_freq, new_freq)
        assert out.shape == ref.shape, (out.shape, ref.shape)
        np.testing.assert_allclose(np.asarray(out), ref, rtol=1e-4, atol=1e-5)

    print("KERNEL_OK")
</pallas_src>

<mosaic_0001>
module attributes {stable_mosaic.version = 11 : i64} {
  func.func @kernel(%arg0: i32, %arg1: memref<2x2x8x256xf32, #tpu.memory_space<vmem>>, %arg2: memref<1x2x8x128xf32, #tpu.memory_space<vmem>>) attributes {dimension_semantics = [#tpu.dimension_semantics<parallel>], iteration_bounds = array<i64: 1>, scalar_prefetch = 0 : i64, scratch_operands = 0 : i64, tpu.core_type = #tpu.core_type<tc>, window_params = [{pipeline_mode = #tpu.pipeline_mode<synchronous>, transform_indices = @transform_0, window_bounds = array<i64: 2, 2, 8, 256>}, {transform_indices = @transform_1, window_bounds = array<i64: 1, 2, 8, 128>}]} {
    %c128_i32 = arith.constant 128 : i32
    %0 = arith.muli %arg0, %c128_i32 : i32
    %1 = tpu.assume_multiple %0, 128 : i32
    %c0_i32 = arith.constant 0 : i32
    %2 = arith.addi %1, %c0_i32 : i32
    %c0 = arith.constant 0 : index
    %c0_0 = arith.constant 0 : index
    %c0_1 = arith.constant 0 : index
    %3 = arith.index_cast %2 : i32 to index
    %4 = vector.load %arg1[%c0, %c0_0, %c0_1, %3] : memref<2x2x8x256xf32, #tpu.memory_space<vmem>>, vector<1x1x8x256xf32>
    %5 = vector.shape_cast %4 : vector<1x1x8x256xf32> to vector<8x256xf32>
    %c1 = arith.constant 1 : index
    %c0_2 = arith.constant 0 : index
    %c0_3 = arith.constant 0 : index
    %6 = arith.index_cast %2 : i32 to index
    %7 = vector.load %arg1[%c1, %c0_2, %c0_3, %6] : memref<2x2x8x256xf32, #tpu.memory_space<vmem>>, vector<1x1x8x256xf32>
    %8 = vector.shape_cast %7 : vector<1x1x8x256xf32> to vector<8x256xf32>
    %9 = vector.extract_strided_slice %5 {offsets = [0, 0], sizes = [8, 128], strides = [1, 1]} : vector<8x256xf32> to vector<8x128xf32>
    %cst = arith.constant -1.22630695E-6 : f32
    %10 = vector.broadcast %cst : f32 to vector<8x128xf32>
    %11 = arith.mulf %9, %10 : vector<8x128xf32>
    %12 = vector.extract_strided_slice %8 {offsets = [0, 0], sizes = [8, 128], strides = [1, 1]} : vector<8x256xf32> to vector<8x128xf32>
    %cst_4 = arith.constant -5.97594655E-4 : f32
    %13 = vector.broadcast %cst_4 : f32 to vector<8x128xf32>
    %14 = arith.mulf %12, %13 : vector<8x128xf32>
    %15 = arith.addf %11, %14 : vector<8x128xf32>
    %16 = vector.extract_strided_slice %5 {offsets = [0, 1], sizes = [8, 128], strides = [1, 1]} : vector<8x256xf32> to vector<8x128xf32>
    %cst_5 = arith.constant 3.66886467E-4 : f32
    %17 = vector.broadcast %cst_5 : f32 to vector<8x128xf32>
    %18 = arith.mulf %16, %17 : vector<8x128xf32>
    %19 = arith.addf %15, %18 : vector<8x128xf32>
    %20 = vector.extract_strided_slice %8 {offsets = [0, 1], sizes = [8, 128], strides = [1, 1]} : vector<8x256xf32> to vector<8x128xf32>
    %cst_6 = arith.constant 0.00542291487 : f32
    %21 = vector.broadcast %cst_6 : f32 to vector<8x128xf32>
    %22 = arith.mulf %20, %21 : vector<8x128xf32>
    %23 = arith.addf %19, %22 : vector<8x128xf32>
    %24 = vector.extract_strided_slice %5 {offsets = [0, 2], sizes = [8, 128], strides = [1, 1]} : vector<8x256xf32> to vector<8x128xf32>
    %cst_7 = arith.constant -0.00129220856 : f32
    %25 = vector.broadcast %cst_7 : f32 to vector<8x128xf32>
    %26 = arith.mulf %24, %25 : vector<8x128xf32>
    %27 = arith.addf %23, %26 : vector<8x128xf32>
    %28 = vector.extract_strided_slice %8 {offsets = [0, 2], sizes = [8, 128], strides = [1, 1]} : vector<8x256xf32> to vector<8x128xf32>
    %cst_8 = arith.constant -0.0171510316 : f32
    %29 = vector.broadcast %cst_8 : f32 to vector<8x128xf32>
    %30 = arith.mulf %28, %29 : vector<8x128xf32>
    %31 = arith.addf %27, %30 : vector<8x128xf32>
    %32 = vector.extract_strided_slice %5 {offsets = [0, 3], sizes = [8, 128], strides = [1, 1]} : vector<8x256xf32> to vector<8x128xf32>
    %cst_9 = arith.constant 0.00253551081 : f32
    %33 = vector.broadcast %cst_9 : f32 to vector<8x128xf32>
    %34 = arith.mulf %32, %33 : vector<8x128xf32>
    %35 = arith.addf %31, %34 : vector<8x128xf32>
    %36 = vector.extract_strided_slice %8 {offsets = [0, 3], sizes = [8, 128], strides = [1, 1]} : vector<8x256xf32> to vector<8x128xf32>
    %cst_10 = arith.constant 0.0403464474 : f32
    %37 = vector.broadcast %cst_10 : f32 to vector<8x128xf32>
    %38 = arith.mulf %36, %37 : vector<8x128xf32>
    %39 = arith.addf %35, %38 : vector<8x128xf32>
    %40 = vector.extract_strided_slice %5 {offsets = [0, 4], sizes = [8, 128], strides = [1, 1]} : vector<8x256xf32> to vector<8x128xf32>
    %cst_11 = arith.constant -0.00377012184 : f32
    %41 = vector.broadcast %cst_11 : f32 to vector<8x128xf32>
    %42 = arith.mulf %40, %41 : vector<8x128xf32>
    %43 = arith.addf %39, %42 : vector<8x128xf32>
    %44 = vector.extract_strided_slice %8 {offsets = [0, 4], sizes = [8, 128], strides = [1, 1]} : vector<8x256xf32> to vector<8x128xf32>
    %cst_12 = arith.constant -0.0907574295 : f32
    %45 = vector.broadcast %cst_12 : f32 to vector<8x128xf32>
    %46 = arith.mulf %44, %45 : vector<8x128xf32>
    %47 = arith.addf %43, %46 : vector<8x128xf32>
    %48 = vector.extract_strided_slice %5 {offsets = [0, 5], sizes = [8, 128], strides = [1, 1]} : vector<8x256xf32> to vector<8x128xf32>
    %cst_13 = arith.constant 0.00467081042 : f32
    %49 = vector.broadcast %cst_13 : f32 to vector<8x128xf32>
    %50 = arith.mulf %48, %49 : vector<8x128xf32>
    %51 = arith.addf %47, %50 : vector<8x128xf32>
    %52 = vector.extract_strided_slice %8 {offsets = [0, 5], sizes = [8, 128], strides = [1, 1]} : vector<8x256xf32> to vector<8x128xf32>
    %cst_14 = arith.constant 0.312955528 : f32
    %53 = vector.broadcast %cst_14 : f32 to vector<8x128xf32>
    %54 = arith.mulf %52, %53 : vector<8x128xf32>
    %55 = arith.addf %51, %54 : vector<8x128xf32>
    %56 = vector.extract_strided_slice %5 {offsets = [0, 6], sizes = [8, 128], strides = [1, 1]} : vector<8x256xf32> to vector<8x128xf32>
    %cst_15 = arith.constant 4.950000e-01 : f32
    %57 = vector.broadcast %cst_15 : f32 to vector<8x128xf32>
    %58 = arith.mulf %56, %57 : vector<8x128xf32>
    %59 = arith.addf %55, %58 : vector<8x128xf32>
    %60 = vector.extract_strided_slice %8 {offsets = [0, 6], sizes = [8, 128], strides = [1, 1]} : vector<8x256xf32> to vector<8x128xf32>
    %cst_16 = arith.constant 0.312955528 : f32
    %61 = vector.broadcast %cst_16 : f32 to vector<8x128xf32>
    %62 = arith.mulf %60, %61 : vector<8x128xf32>
    %63 = arith.addf %59, %62 : vector<8x128xf32>
    %64 = vector.extract_strided_slice %5 {offsets = [0, 7], sizes = [8, 128], strides = [1, 1]} : vector<8x256xf32> to vector<8x128xf32>
    %cst_17 = arith.constant 0.00467081042 : f32
    %65 = vector.broadcast %cst_17 : f32 to vector<8x128xf32>
    %66 = arith.mulf %64, %65 : vector<8x128xf32>
    %67 = arith.addf %63, %66 : vector<8x128xf32>
    %68 = vector.extract_strided_slice %8 {offsets = [0, 7], sizes = [8, 128], strides = [1, 1]} : vector<8x256xf32> to vector<8x128xf32>
    %cst_18 = arith.constant -0.0907574295 : f32
    %69 = vector.broadcast %cst_18 : f32 to vector<8x128xf32>
    %70 = arith.mulf %68, %69 : vector<8x128xf32>
    %71 = arith.addf %67, %70 : vector<8x128xf32>
    %72 = vector.extract_strided_slice %5 {offsets = [0, 8], sizes = [8, 128], strides = [1, 1]} : vector<8x256xf32> to vector<8x128xf32>
    %cst_19 = arith.constant -0.00377012184 : f32
    %73 = vector.broadcast %cst_19 : f32 to vector<8x128xf32>
    %74 = arith.mulf %72, %73 : vector<8x128xf32>
    %75 = arith.addf %71, %74 : vector<8x128xf32>
    %76 = vector.extract_strided_slice %8 {offsets = [0, 8], sizes = [8, 128], strides = [1, 1]} : vector<8x256xf32> to vector<8x128xf32>
    %cst_20 = arith.constant 0.0403464474 : f32
    %77 = vector.broadcast %cst_20 : f32 to vector<8x128xf32>
    %78 = arith.mulf %76, %77 : vector<8x128xf32>
    %79 = arith.addf %75, %78 : vector<8x128xf32>
    %80 = vector.extract_strided_slice %5 {offsets = [0, 9], sizes = [8, 128], strides = [1, 1]} : vector<8x256xf32> to vector<8x128xf32>
    %cst_21 = arith.constant 0.00253551081 : f32
    %81 = vector.broadcast %cst_21 : f32 to vector<8x128xf32>
    %82 = arith.mulf %80, %81 : vector<8x128xf32>
    %83 = arith.addf %79, %82 : vector<8x128xf32>
    %84 = vector.extract_strided_slice %8 {offsets = [0, 9], sizes = [8, 128], strides = [1, 1]} : vector<8x256xf32> to vector<8x128xf32>
    %cst_22 = arith.constant -0.0171510316 : f32
    %85 = vector.broadcast %cst_22 : f32 to vector<8x128xf32>
    %86 = arith.mulf %84, %85 : vector<8x128xf32>
    %87 = arith.addf %83, %86 : vector<8x128xf32>
    %88 = vector.extract_strided_slice %5 {offsets = [0, 10], sizes = [8, 128], strides = [1, 1]} : vector<8x256xf32> to vector<8x128xf32>
    %cst_23 = arith.constant -0.00129220856 : f32
    %89 = vector.broadcast %cst_23 : f32 to vector<8x128xf32>
    %90 = arith.mulf %88, %89 : vector<8x128xf32>
    %91 = arith.addf %87, %90 : vector<8x128xf32>
    %92 = vector.extract_strided_slice %8 {offsets = [0, 10], sizes = [8, 128], strides = [1, 1]} : vector<8x256xf32> to vector<8x128xf32>
    %cst_24 = arith.constant 0.00542291487 : f32
    %93 = vector.broadcast %cst_24 : f32 to vector<8x128xf32>
    %94 = arith.mulf %92, %93 : vector<8x128xf32>
    %95 = arith.addf %91, %94 : vector<8x128xf32>
    %96 = vector.extract_strided_slice %5 {offsets = [0, 11], sizes = [8, 128], strides = [1, 1]} : vector<8x256xf32> to vector<8x128xf32>
    %cst_25 = arith.constant 3.66886467E-4 : f32
    %97 = vector.broadcast %cst_25 : f32 to vector<8x128xf32>
    %98 = arith.mulf %96, %97 : vector<8x128xf32>
    %99 = arith.addf %95, %98 : vector<8x128xf32>
    %100 = vector.extract_strided_slice %8 {offsets = [0, 11], sizes = [8, 128], strides = [1, 1]} : vector<8x256xf32> to vector<8x128xf32>
    %cst_26 = arith.constant -5.97594655E-4 : f32
    %101 = vector.broadcast %cst_26 : f32 to vector<8x128xf32>
    %102 = arith.mulf %100, %101 : vector<8x128xf32>
    %103 = arith.addf %99, %102 : vector<8x128xf32>
    %104 = vector.extract_strided_slice %5 {offsets = [0, 12], sizes = [8, 128], strides = [1, 1]} : vector<8x256xf32> to vector<8x128xf32>
    %cst_27 = arith.constant -1.22630695E-6 : f32
    %105 = vector.broadcast %cst_27 : f32 to vector<8x128xf32>
    %106 = arith.mulf %104, %105 : vector<8x128xf32>
    %107 = arith.addf %103, %106 : vector<8x128xf32>
    %c0_28 = arith.constant 0 : index
    %c0_29 = arith.constant 0 : index
    %c0_30 = arith.constant 0 : index
    %c0_31 = arith.constant 0 : index
    %108 = vector.load %arg2[%c0_28, %c0_29, %c0_30, %c0_31] : memref<1x2x8x128xf32, #tpu.memory_space<vmem>>, vector<1x1x8x128xf32>
    %109 = vector.shape_cast %108 : vector<1x1x8x128xf32> to vector<8x128xf32>
    %110 = vector.shape_cast %107 : vector<8x128xf32> to vector<1x1x8x128xf32>
    tpu.vector_store %arg2[%c0_28, %c0_29, %c0_30, %c0_31], %110 {strides = array<i32>} : memref<1x2x8x128xf32, #tpu.memory_space<vmem>>, vector<1x1x8x128xf32>,
    %c0_32 = arith.constant 0 : index
    %c1_33 = arith.constant 1 : index
    %c0_34 = arith.constant 0 : index
    %111 = arith.index_cast %2 : i32 to index
    %112 = vector.load %arg1[%c0_32, %c1_33, %c0_34, %111] : memref<2x2x8x256xf32, #tpu.memory_space<vmem>>, vector<1x1x8x256xf32>
    %113 = vector.shape_cast %112 : vector<1x1x8x256xf32> to vector<8x256xf32>
    %c1_35 = arith.constant 1 : index
    %c1_36 = arith.constant 1 : index
    %c0_37 = arith.constant 0 : index
    %114 = arith.index_cast %2 : i32 to index
    %115 = vector.load %arg1[%c1_35, %c1_36, %c0_37, %114] : memref<2x2x8x256xf32, #tpu.memory_space<vmem>>, vector<1x1x8x256xf32>
    %116 = vector.shape_cast %115 : vector<1x1x8x256xf32> to vector<8x256xf32>
    %117 = vector.extract_strided_slice %113 {offsets = [0, 0], sizes = [8, 128], strides = [1, 1]} : vector<8x256xf32> to vector<8x128xf32>
    %cst_38 = arith.constant -1.22630695E-6 : f32
    %118 = vector.broadcast %cst_38 : f32 to vector<8x128xf32>
    %119 = arith.mulf %117, %118 : vector<8x128xf32>
    %120 = vector.extract_strided_slice %116 {offsets = [0, 0], sizes = [8, 128], strides = [1, 1]} : vector<8x256xf32> to vector<8x128xf32>
    %cst_39 = arith.constant -5.97594655E-4 : f32
    %121 = vector.broadcast %cst_39 : f32 to vector<8x128xf32>
    %122 = arith.mulf %120, %121 : vector<8x128xf32>
    %123 = arith.addf %119, %122 : vector<8x128xf32>
    %124 = vector.extract_strided_slice %113 {offsets = [0, 1], sizes = [8, 128], strides = [1, 1]} : vector<8x256xf32> to vector<8x128xf32>
    %cst_40 = arith.constant 3.66886467E-4 : f32
    %125 = vector.broadcast %cst_40 : f32 to vector<8x128xf32>
    %126 = arith.mulf %124, %125 : vector<8x128xf32>
    %127 = arith.addf %123, %126 : vector<8x128xf32>
    %128 = vector.extract_strided_slice %116 {offsets = [0, 1], sizes = [8, 128], strides = [1, 1]} : vector<8x256xf32> to vector<8x128xf32>
    %cst_41 = arith.constant 0.00542291487 : f32
    %129 = vector.broadcast %cst_41 : f32 to vector<8x128xf32>
    %130 = arith.mulf %128, %129 : vector<8x128xf32>
    %131 = arith.addf %127, %130 : vector<8x128xf32>
    %132 = vector.extract_strided_slice %113 {offsets = [0, 2], sizes = [8, 128], strides = [1, 1]} : vector<8x256xf32> to vector<8x128xf32>
    %cst_42 = arith.constant -0.00129220856 : f32
    %133 = vector.broadcast %cst_42 : f32 to vector<8x128xf32>
    %134 = arith.mulf %132, %133 : vector<8x128xf32>
    %135 = arith.addf %131, %134 : vector<8x128xf32>
    %136 = vector.extract_strided_slice %116 {offsets = [0, 2], sizes = [8, 128], strides = [1, 1]} : vector<8x256xf32> to vector<8x128xf32>
    %cst_43 = arith.constant -0.0171510316 : f32
    %137 = vector.broadcast %cst_43 : f32 to vector<8x128xf32>
    %138 = arith.mulf %136, %137 : vector<8x128xf32>
    %139 = arith.addf %135, %138 : vector<8x128xf32>
    %140 = vector.extract_strided_slice %113 {offsets = [0, 3], sizes = [8, 128], strides = [1, 1]} : vector<8x256xf32> to vector<8x128xf32>
    %cst_44 = arith.constant 0.00253551081 : f32
    %141 = vector.broadcast %cst_44 : f32 to vector<8x128xf32>
    %142 = arith.mulf %140, %141 : vector<8x128xf32>
    %143 = arith.addf %139, %142 : vector<8x128xf32>
    %144 = vector.extract_strided_slice %116 {offsets = [0, 3], sizes = [8, 128], strides = [1, 1]} : vector<8x256xf32> to vector<8x128xf32>
    %cst_45 = arith.constant 0.0403464474 : f32
    %145 = vector.broadcast %cst_45 : f32 to vector<8x128xf32>
    %146 = arith.mulf %144, %145 : vector<8x128xf32>
    %147 = arith.addf %143, %146 : vector<8x128xf32>
    %148 = vector.extract_strided_slice %113 {offsets = [0, 4], sizes = [8, 128], strides = [1, 1]} : vector<8x256xf32> to vector<8x128xf32>
    %cst_46 = arith.constant -0.00377012184 : f32
    %149 = vector.broadcast %cst_46 : f32 to vector<8x128xf32>
    %150 = arith.mulf %148, %149 : vector<8x128xf32>
    %151 = arith.addf %147, %150 : vector<8x128xf32>
    %152 = vector.extract_strided_slice %116 {offsets = [0, 4], sizes = [8, 128], strides = [1, 1]} : vector<8x256xf32> to vector<8x128xf32>
    %cst_47 = arith.constant -0.0907574295 : f32
    %153 = vector.broadcast %cst_47 : f32 to vector<8x128xf32>
    %154 = arith.mulf %152, %153 : vector<8x128xf32>
    %155 = arith.addf %151, %154 : vector<8x128xf32>
    %156 = vector.extract_strided_slice %113 {offsets = [0, 5], sizes = [8, 128], strides = [1, 1]} : vector<8x256xf32> to vector<8x128xf32>
    %cst_48 = arith.constant 0.00467081042 : f32
    %157 = vector.broadcast %cst_48 : f32 to vector<8x128xf32>
    %158 = arith.mulf %156, %157 : vector<8x128xf32>
    %159 = arith.addf %155, %158 : vector<8x128xf32>
    %160 = vector.extract_strided_slice %116 {offsets = [0, 5], sizes = [8, 128], strides = [1, 1]} : vector<8x256xf32> to vector<8x128xf32>
    %cst_49 = arith.constant 0.312955528 : f32
    %161 = vector.broadcast %cst_49 : f32 to vector<8x128xf32>
    %162 = arith.mulf %160, %161 : vector<8x128xf32>
    %163 = arith.addf %159, %162 : vector<8x128xf32>
    %164 = vector.extract_strided_slice %113 {offsets = [0, 6], sizes = [8, 128], strides = [1, 1]} : vector<8x256xf32> to vector<8x128xf32>
    %cst_50 = arith.constant 4.950000e-01 : f32
    %165 = vector.broadcast %cst_50 : f32 to vector<8x128xf32>
    %166 = arith.mulf %164, %165 : vector<8x128xf32>
    %167 = arith.addf %163, %166 : vector<8x128xf32>
    %168 = vector.extract_strided_slice %116 {offsets = [0, 6], sizes = [8, 128], strides = [1, 1]} : vector<8x256xf32> to vector<8x128xf32>
    %cst_51 = arith.constant 0.312955528 : f32
    %169 = vector.broadcast %cst_51 : f32 to vector<8x128xf32>
    %170 = arith.mulf %168, %169 : vector<8x128xf32>
    %171 = arith.addf %167, %170 : vector<8x128xf32>
    %172 = vector.extract_strided_slice %113 {offsets = [0, 7], sizes = [8, 128], strides = [1, 1]} : vector<8x256xf32> to vector<8x128xf32>
    %cst_52 = arith.constant 0.00467081042 : f32
    %173 = vector.broadcast %cst_52 : f32 to vector<8x128xf32>
    %174 = arith.mulf %172, %173 : vector<8x128xf32>
    %175 = arith.addf %171, %174 : vector<8x128xf32>
    %176 = vector.extract_strided_slice %116 {offsets = [0, 7], sizes = [8, 128], strides = [1, 1]} : vector<8x256xf32> to vector<8x128xf32>
    %cst_53 = arith.constant -0.0907574295 : f32
    %177 = vector.broadcast %cst_53 : f32 to vector<8x128xf32>
    %178 = arith.mulf %176, %177 : vector<8x128xf32>
    %179 = arith.addf %175, %178 : vector<8x128xf32>
    %180 = vector.extract_strided_slice %113 {offsets = [0, 8], sizes = [8, 128], strides = [1, 1]} : vector<8x256xf32> to vector<8x128xf32>
    %cst_54 = arith.constant -0.00377012184 : f32
    %181 = vector.broadcast %cst_54 : f32 to vector<8x128xf32>
    %182 = arith.mulf %180, %181 : vector<8x128xf32>
    %183 = arith.addf %179, %182 : vector<8x128xf32>
    %184 = vector.extract_strided_slice %116 {offsets = [0, 8], sizes = [8, 128], strides = [1, 1]} : vector<8x256xf32> to vector<8x128xf32>
    %cst_55 = arith.constant 0.0403464474 : f32
    %185 = vector.broadcast %cst_55 : f32 to vector<8x128xf32>
    %186 = arith.mulf %184, %185 : vector<8x128xf32>
    %187 = arith.addf %183, %186 : vector<8x128xf32>
    %188 = vector.extract_strided_slice %113 {offsets = [0, 9], sizes = [8, 128], strides = [1, 1]} : vector<8x256xf32> to vector<8x128xf32>
    %cst_56 = arith.constant 0.00253551081 : f32
    %189 = vector.broadcast %cst_56 : f32 to vector<8x128xf32>
    %190 = arith.mulf %188, %189 : vector<8x128xf32>
    %191 = arith.addf %187, %190 : vector<8x128xf32>
    %192 = vector.extract_strided_slice %116 {offsets = [0, 9], sizes = [8, 128], strides = [1, 1]} : vector<8x256xf32> to vector<8x128xf32>
    %cst_57 = arith.constant -0.0171510316 : f32
    %193 = vector.broadcast %cst_57 : f32 to vector<8x128xf32>
    %194 = arith.mulf %192, %193 : vector<8x128xf32>
    %195 = arith.addf %191, %194 : vector<8x128xf32>
    %196 = vector.extract_strided_slice %113 {offsets = [0, 10], sizes = [8, 128], strides = [1, 1]} : vector<8x256xf32> to vector<8x128xf32>
    %cst_58 = arith.constant -0.00129220856 : f32
    %197 = vector.broadcast %cst_58 : f32 to vector<8x128xf32>
    %198 = arith.mulf %196, %197 : vector<8x128xf32>
    %199 = arith.addf %195, %198 : vector<8x128xf32>
    %200 = vector.extract_strided_slice %116 {offsets = [0, 10], sizes = [8, 128], strides = [1, 1]} : vector<8x256xf32> to vector<8x128xf32>
    %cst_59 = arith.constant 0.00542291487 : f32
    %201 = vector.broadcast %cst_59 : f32 to vector<8x128xf32>
    %202 = arith.mulf %200, %201 : vector<8x128xf32>
    %203 = arith.addf %199, %202 : vector<8x128xf32>
    %204 = vector.extract_strided_slice %113 {offsets = [0, 11], sizes = [8, 128], strides = [1, 1]} : vector<8x256xf32> to vector<8x128xf32>
    %cst_60 = arith.constant 3.66886467E-4 : f32
    %205 = vector.broadcast %cst_60 : f32 to vector<8x128xf32>
    %206 = arith.mulf %204, %205 : vector<8x128xf32>
    %207 = arith.addf %203, %206 : vector<8x128xf32>
    %208 = vector.extract_strided_slice %116 {offsets = [0, 11], sizes = [8, 128], strides = [1, 1]} : vector<8x256xf32> to vector<8x128xf32>
    %cst_61 = arith.constant -5.97594655E-4 : f32
    %209 = vector.broadcast %cst_61 : f32 to vector<8x128xf32>
    %210 = arith.mulf %208, %209 : vector<8x128xf32>
    %211 = arith.addf %207, %210 : vector<8x128xf32>
    %212 = vector.extract_strided_slice %113 {offsets = [0, 12], sizes = [8, 128], strides = [1, 1]} : vector<8x256xf32> to vector<8x128xf32>
    %cst_62 = arith.constant -1.22630695E-6 : f32
    %213 = vector.broadcast %cst_62 : f32 to vector<8x128xf32>
    %214 = arith.mulf %212, %213 : vector<8x128xf32>
    %215 = arith.addf %211, %214 : vector<8x128xf32>
    %c0_63 = arith.constant 0 : index
    %c1_64 = arith.constant 1 : index
    %c0_65 = arith.constant 0 : index
    %c0_66 = arith.constant 0 : index
    %216 = vector.load %arg2[%c0_63, %c1_64, %c0_65, %c0_66] : memref<1x2x8x128xf32, #tpu.memory_space<vmem>>, vector<1x1x8x128xf32>
    %217 = vector.shape_cast %216 : vector<1x1x8x128xf32> to vector<8x128xf32>
    %218 = vector.shape_cast %215 : vector<8x128xf32> to vector<1x1x8x128xf32>
    tpu.vector_store %arg2[%c0_63, %c1_64, %c0_65, %c0_66], %218 {strides = array<i32>} : memref<1x2x8x128xf32, #tpu.memory_space<vmem>>, vector<1x1x8x128xf32>,
    return
  }
  func.func @transform_0(%arg0: i32) -> (i32, i32, i32, i32) {
    %c0_i32 = arith.constant 0 : i32
    %c0_i32_0 = arith.constant 0 : i32
    %c0_i32_1 = arith.constant 0 : i32
    %c0_i32_2 = arith.constant 0 : i32
    %c0_i32_3 = arith.constant 0 : i32
    return %c0_i32, %c0_i32_0, %c0_i32_1, %c0_i32_2 : i32, i32, i32, i32
  }
  func.func @transform_1(%arg0: i32) -> (i32, i32, i32, i32) {
    %c0_i32 = arith.constant 0 : i32
    %c0_i32_0 = arith.constant 0 : i32
    %c0_i32_1 = arith.constant 0 : i32
    %c0_i32_2 = arith.constant 0 : i32
    return %c0_i32, %c0_i32_0, %c0_i32_1, %arg0 : i32, i32, i32, i32
  }
}

</mosaic_0001>

<bundles_post_ra>
// kernel: tpu_custom_call.1
= control target key start
LH: loop header
LB: loop body
LE: loop exit
PB: predicated region body
PF: predicated region fallthrough
CT: control target
= control target key end

     0   :  { %6 = vsyncpa [#allocation3], 0  ;;  %s910_s0 = inlined_call_operand.hbm [shape: f32[2,2,8,256], index: 0, kind: input, shape index: {}]   ;;  %s911_s1 = inlined_call_operand.hbm [shape: f32[1,2,8,128], index: 1, kind: output, shape index: {}]  }
   0x1   :  { %7 = vsyncpa [#allocation4], 0  ;;  %s582_s6 = smov [#allocation2]   ;;  %s534_s10 = scalar_lea.hbm %s910_s0, 1024 }
   0x2   :  { %s13_s7 = sshll.u32 %s582_s6, 4  ;;  %p535_p0 = scmp.ne.s32.totalorder %s910_s0, %s534_s10  ;;  %s14_s7 = int_to_ptr.vmem [resolvable:$true] %s13_s7 }
   0x3   :  { %p538_p1 = scmp.lt.u32.totalorder %s534_s10, %s910_s0 }
   0x5   :  { %p540_p2 = pnand %p538_p1, %p535_p0 }
   0x7   :  { %543 = shalt.err (!%p540_p2)
}
   0x8   :  { %s544_s15 = scalar_lea.vmem %s14_s7, 1024  ;;  %p549_p4 = scmp.lt.s32.totalorder %s14_s7, %s14_s7 }
   0x9   :  { %p545_p3 = scmp.ne.s32.totalorder %s14_s7, %s544_s15  ;;  %p550_p5 = scmp.lt.s32.totalorder %s544_s15, %s544_s15 }
   0xb   :  { %p551_p6 = por %p550_p5, %p549_p4 }
   0xd   :  { %p552_p7 = pnand %p551_p6, %p545_p3 }
   0xf   :  { %555 = shalt.err (!%p552_p7)
}
  0x10   :  { %s583_s16 = smov 256   ;;  %s584_s17 = smov 16  }
  0x11   :  { %19 = dma.hbm_to_vmem [thread:$0]  %s910_s0, 1024, %s14_s7, [#allocation3], %s583_s16, %s583_s16, %s584_s17  }
  0x12   :  { %578 = dma.done.wait [#allocation3], 1024  }
  0x13   :  { %579 = vsyncadd [#allocation3], 4294966272  ;;  %v622_v0 = vld [vmem:[#allocation2 + $0x20] sm:$0xff]  ;;  %v626_v2 = vld [vmem:[#allocation2 + $0x28] sm:$0xff]  ;;  %s585_s20 = smov 127   ;;  %s586_s0 = smov 126  }
  0x14   :  { %v624_v1 = vld [vmem:[#allocation2] sm:$0xff]  ;;  %v629_v3 = vmul.f32 0.005422915, %v622_v0  ;;  %v634_v5 = vld [vmem:[#allocation2 + $0x8] sm:$0xff]  ;;  %v641_v6 = vmul.f32 0.005422915, %v626_v2 }
  0x15   :  { %v632_v4 = vmul.f32 0.00036688647, %v624_v1  ;;  %v644_v7 = vmul.f32 0.00036688647, %v634_v5  ;;  %v62_v8 = vmul.f32 -0.0012922086, %v634_v5 }
  0x16   :  { %54 = vrot.lane.b32.xlu1 %v629_v3, %s585_s20  ;;  %v61_v9 = vmul.f32 -0.0012922086, %v624_v1  ;;  %v74_v10 = vmul.f32 -0.017151032, %v626_v2  ;;  %v73_v11 = vmul.f32 -0.017151032, %v622_v0 }
  0x17   :  { %42 = vrot.lane.b32.xlu0 %v632_v4, %s585_s20  ;;  %v85_v12 = vmul.f32 0.0025355108, %v634_v5  ;;  %v84_v13 = vmul.f32 0.0025355108, %v624_v1  ;;  %s587_s21 = smov 125   ;;  %s588_s22 = smov 124  }
  0x18   :  { %v97_v14 = vmul.f32 0.040346447, %v626_v2  ;;  %v96_v15 = vmul.f32 0.040346447, %v622_v0  ;;  %v108_v16 = vmul.f32 -0.0037701218, %v634_v5 }
  0x19   :  { %v107_v17 = vmul.f32 -0.0037701218, %v624_v1  ;;  %v120_v18 = vmul.f32 -0.09075743, %v626_v2  ;;  %v119_v19 = vmul.f32 -0.09075743, %v622_v0 }
  0x1a   :  { %56 = vrot.lane.b32.xlu1 %v641_v6, %s585_s20  ;;  %v131_v20 = vmul.f32 0.0046708104, %v634_v5  ;;  %v130_v21 = vmul.f32 0.0046708104, %v624_v1  ;;  %s589_s23 = smov 123   ;;  %s590_s24 = smov 122  }
  0x1b   :  { %44 = vrot.lane.b32.xlu0 %v644_v7, %s585_s20  ;;  %v143_v22 = vmul.f32 0.31295553, %v626_v2  ;;  %v142_v23 = vmul.f32 0.31295553, %v622_v0  ;;  %v154_v24 = vmul.f32 0.495, %v634_v5 }
  0x1c   :  { %v153_v25 = vmul.f32 0.495, %v624_v1  ;;  %s591_s25 = smov 121   ;;  %s592_s26 = smov 120   ;;  %v700_v26 = vld [vmem:[#allocation2 + $0x10] sm:$0xff]  ;;  %v709_v29 = vld [vmem:[#allocation2 + $0x18] sm:$0xff] }
  0x1d   :  { %s593_s27 = smov 119   ;;  %s594_s28 = smov 118   ;;  %v705_v27 = vmul.f32 0.00036688647, %v700_v26  ;;  %v707_v28 = vld [vmem:[#allocation2 + $0x30] sm:$0xff]  ;;  %v721_v32 = vld [vmem:[#allocation2 + $0x38] sm:$0xff] }
  0x1e   :  { %67 = vrot.lane.b32.xlu1 %v62_v8, %s586_s0  ;;  %v716_v30 = vmul.f32 0.005422915, %v707_v28  ;;  %v719_v31 = vmul.f32 0.00036688647, %v709_v29  ;;  %v728_v33 = vmul.f32 -0.0012922086, %v700_v26 }
  0x1f   :  { %65 = vrot.lane.b32.xlu0 %v61_v9, %s586_s0  ;;  %v731_v34 = vmul.f32 0.005422915, %v721_v32  ;;  %v738_v35 = vmul.f32 -0.017151032, %v707_v28  ;;  %v741_v36 = vmul.f32 -0.0012922086, %v709_v29 }
  0x20   :  { %v748_v37 = vmul.f32 0.0025355108, %v700_v26  ;;  %v751_v38 = vmul.f32 -0.017151032, %v721_v32  ;;  %v758_v39 = vmul.f32 0.040346447, %v707_v28 }
  0x21   :  { %v761_v40 = vmul.f32 0.0025355108, %v709_v29  ;;  %v341_v41 = vmul.f32 -0.0037701218, %v700_v26  ;;  %v769_v42 = vmul.f32 0.040346447, %v721_v32 }
  0x22   :  { %79 = vrot.lane.b32.xlu1 %v74_v10, %s586_s0  ;;  %v352_v43 = vmul.f32 -0.09075743, %v707_v28  ;;  %v342_v44 = vmul.f32 -0.0037701218, %v709_v29  ;;  %v363_v45 = vmul.f32 0.0046708104, %v700_v26 }
  0x23   :  { %77 = vrot.lane.b32.xlu0 %v73_v11, %s586_s0  ;;  %v353_v46 = vmul.f32 -0.09075743, %v721_v32  ;;  %v374_v47 = vmul.f32 0.31295553, %v707_v28  ;;  %v364_v48 = vmul.f32 0.0046708104, %v709_v29 }
  0x24   :  { %v385_v49 = vmul.f32 0.495, %v700_v26  ;;  %v375_v50 = vmul.f32 0.31295553, %v721_v32  ;;  %v789_v51 = vmul.f32 -0.00059759466, %v622_v0 }
  0x25   :  { %v792_v52 = vmul.f32 -1.226307e-06, %v624_v1  ;;  %vm46_vm0 = vcmask 1039360   ;;  %v386_v56 = vmul.f32 0.495, %v709_v29  ;;  %vm69_vm1 = vcmask 1031168  }
  0x26   :  { %90 = vrot.lane.b32.xlu1 %v85_v12, %s587_s21  ;;  %vm92_vm2 = vcmask 1022976   ;;  %vm115_vm3 = vcmask 1014784   ;;  %vm138_vm4 = vcmask 1006592   ;;  %vm161_vm5 = vcmask 998400   ;;  %s595_s29 = smov 117   ;;  %s596_s30 = smov 116  }
  0x27   :  { %88 = vrot.lane.b32.xlu0 %v84_v13, %s587_s21  ;;  %v37_v55 = vadd.f32 %v789_v51, %v792_v52  ;;  %vm176_vm6 = vcmask 990208   ;;  %vm191_vm7 = vcmask 982016   ;;  %vm206_vm8 = vcmask 973824   ;;  %s597_s2 = smov [#allocation5]  }
  0x28   :  { %vm221_vm9 = vcmask 965632   ;;  %vm236_vm10 = vcmask 957440   ;;  %vm257_vm11 = vcmask 949248   ;;  %s493_s3 = sshll.u32 %s597_s2, 4  ;;  %s494_s3 = int_to_ptr.vmem [resolvable:$true] %s493_s3 }
  0x29   :  { %s556_s4 = scalar_lea.vmem %s494_s3, 256  ;;  %p561_p9 = scmp.lt.s32.totalorder %s494_s3, %s494_s3 }
  0x2a   :  { %102 = vrot.lane.b32.xlu1 %v97_v14, %s587_s21  ;;  %p557_p8 = scmp.ne.s32.totalorder %s494_s3, %s556_s4  ;;  %p562_p10 = scmp.lt.s32.totalorder %s556_s4, %s556_s4 }
  0x2b   :  { %100 = vrot.lane.b32.xlu0 %v96_v15, %s587_s21 }
  0x2c   :  { %p563_p11 = por %p562_p10, %p561_p9 }
  0x2e   :  { %113 = vrot.lane.b32.xlu1 %v108_v16, %s588_s22  ;;  %p564_p12 = pnand %p563_p11, %p557_p8 }
  0x2f   :  { %111 = vrot.lane.b32.xlu0 %v107_v17, %s588_s22 }
  0x32   :  { %125 = vrot.lane.b32.xlu1 %v120_v18, %s588_s22 }
  0x33   :  { %123 = vrot.lane.b32.xlu0 %v119_v19, %s588_s22 }
  0x36   :  { %136 = vrot.lane.b32.xlu1 %v131_v20, %s589_s23 }
  0x37   :  { %134 = vrot.lane.b32.xlu0 %v130_v21, %s589_s23 }
  0x3a   :  { %148 = vrot.lane.b32.xlu1 %v143_v22, %s589_s23 }
  0x3b   :  { %146 = vrot.lane.b32.xlu0 %v142_v23, %s589_s23 }
  0x3e   :  { %159 = vrot.lane.b32.xlu1 %v154_v24, %s590_s24 }
  0x3f   :  { %157 = vrot.lane.b32.xlu0 %v153_v25, %s590_s24 }
  0x42   :  { %167 = vrot.lane.b32.xlu1 %v143_v22, %s590_s24 }
  0x43   :  { %165 = vrot.lane.b32.xlu0 %v142_v23, %s590_s24 }
  0x46   :  { %174 = vrot.lane.b32.xlu1 %v131_v20, %s591_s25 }
  0x47   :  { %172 = vrot.lane.b32.xlu0 %v130_v21, %s591_s25 }
  0x4a   :  { %182 = vrot.lane.b32.xlu1 %v120_v18, %s591_s25 }
  0x4b   :  { %180 = vrot.lane.b32.xlu0 %v119_v19, %s591_s25 }
  0x4e   :  { %189 = vrot.lane.b32.xlu1 %v108_v16, %s592_s26 }
  0x4f   :  { %187 = vrot.lane.b32.xlu0 %v107_v17, %s592_s26 }
  0x52   :  { %197 = vrot.lane.b32.xlu1 %v97_v14, %s592_s26 }
  0x53   :  { %195 = vrot.lane.b32.xlu0 %v96_v15, %s592_s26 }
  0x56   :  { %204 = vrot.lane.b32.xlu1 %v85_v12, %s593_s27 }
  0x57   :  { %202 = vrot.lane.b32.xlu0 %v84_v13, %s593_s27 }
  0x5a   :  { %212 = vrot.lane.b32.xlu1 %v74_v10, %s593_s27 }
  0x5b   :  { %210 = vrot.lane.b32.xlu0 %v73_v11, %s593_s27 }
  0x5e   :  { %219 = vrot.lane.b32.xlu1 %v62_v8, %s594_s28 }
  0x5f   :  { %217 = vrot.lane.b32.xlu0 %v61_v9, %s594_s28 }
  0x62   :  { %279 = vrot.lane.b32.xlu1 %v705_v27, %s585_s20 }
  0x63   :  { %225 = vrot.lane.b32.xlu0 %v629_v3, %s594_s28 }
  0x66   :  { %290 = vrot.lane.b32.xlu1 %v716_v30, %s585_s20 }
  0x67   :  { %281 = vrot.lane.b32.xlu0 %v719_v31, %s585_s20 }
  0x6a   :  { %301 = vrot.lane.b32.xlu1 %v728_v33, %s586_s0 }
  0x6b   :  { %292 = vrot.lane.b32.xlu0 %v731_v34, %s585_s20 }
  0x6e   :  { %312 = vrot.lane.b32.xlu1 %v738_v35, %s586_s0 }
  0x6f   :  { %303 = vrot.lane.b32.xlu0 %v741_v36, %s586_s0 }
  0x72   :  { %323 = vrot.lane.b32.xlu1 %v748_v37, %s587_s21 }
  0x73   :  { %314 = vrot.lane.b32.xlu0 %v751_v38, %s586_s0 }
  0x76   :  { %334 = vrot.lane.b32.xlu1 %v758_v39, %s587_s21 }
  0x77   :  { %325 = vrot.lane.b32.xlu0 %v761_v40, %s587_s21 }
  0x7a   :  { %345 = vrot.lane.b32.xlu1 %v341_v41, %s588_s22 }
  0x7b   :  { %336 = vrot.lane.b32.xlu0 %v769_v42, %s587_s21 }
  0x7e   :  { %356 = vrot.lane.b32.xlu1 %v352_v43, %s588_s22 }
  0x7f   :  { %347 = vrot.lane.b32.xlu0 %v342_v44, %s588_s22 }
  0x82   :  { %367 = vrot.lane.b32.xlu1 %v363_v45, %s589_s23 }
  0x83   :  { %358 = vrot.lane.b32.xlu0 %v353_v46, %s588_s22 }
  0x86   :  { %378 = vrot.lane.b32.xlu1 %v374_v47, %s589_s23 }
  0x87   :  { %369 = vrot.lane.b32.xlu0 %v364_v48, %s589_s23 }
  0x88   :  { %v55_v53 = vpop.permute.xlu1 %54 }
  0x89   :  { %v43_v54 = vpop.permute.xlu0 %42 }
  0x8a   :  { %389 = vrot.lane.b32.xlu1 %v385_v49, %s590_s24 }
  0x8b   :  { %380 = vrot.lane.b32.xlu0 %v375_v50, %s589_s23 }
  0x8c   :  { %v57_v57 = vpop.permute.xlu1 %56 }
  0x8d   :  { %v45_v58 = vpop.permute.xlu0 %44  ;;  %v58_v59 = vsel %vm46_vm0, %v55_v53, %v57_v57 }
  0x8e   :  { %v47_v60 = vsel %vm46_vm0, %v43_v54, %v45_v58  ;;  %396 = vrot.lane.b32.xlu1 %v374_v47, %s590_s24 }
  0x8f   :  { %v49_v61 = vadd.f32 %v47_v60, %v37_v55  ;;  %391 = vrot.lane.b32.xlu0 %v386_v56, %s590_s24 }
  0x90   :  { %v68_v62 = vpop.permute.xlu1 %67 }
  0x91   :  { %v66_v63 = vpop.permute.xlu0 %65  ;;  %v60_v0 = vadd.f32 %v58_v59, %v49_v61 }
  0x92   :  { %v70_v1 = vsel %vm69_vm1, %v66_v63, %v68_v62  ;;  %403 = vrot.lane.b32.xlu1 %v363_v45, %s591_s25 }
  0x93   :  { %v72_v3 = vadd.f32 %v70_v1, %v60_v0  ;;  %398 = vrot.lane.b32.xlu0 %v375_v50, %s590_s24 }
  0x94   :  { %v80_v8 = vpop.permute.xlu1 %79 }
  0x95   :  { %v78_v9 = vpop.permute.xlu0 %77 }
  0x96   :  { %v81_v10 = vsel %vm69_vm1, %v78_v9, %v80_v8  ;;  %410 = vrot.lane.b32.xlu1 %v352_v43, %s591_s25 }
  0x97   :  { %v83_v11 = vadd.f32 %v81_v10, %v72_v3  ;;  %405 = vrot.lane.b32.xlu0 %v364_v48, %s591_s25 }
  0x98   :  { %v91_v12 = vpop.permute.xlu1 %90 }
  0x99   :  { %v89_v13 = vpop.permute.xlu0 %88 }
  0x9a   :  { %v93_v14 = vsel %vm92_vm2, %v89_v13, %v91_v12  ;;  %417 = vrot.lane.b32.xlu1 %v341_v41, %s592_s26 }
  0x9b   :  { %v95_v15 = vadd.f32 %v93_v14, %v83_v11  ;;  %412 = vrot.lane.b32.xlu0 %v353_v46, %s591_s25 }
  0x9c   :  { %v103_v16 = vpop.permute.xlu1 %102 }
  0x9d   :  { %v101_v17 = vpop.permute.xlu0 %100 }
  0x9e   :  { %v104_v18 = vsel %vm92_vm2, %v101_v17, %v103_v16  ;;  %424 = vrot.lane.b32.xlu1 %v758_v39, %s592_s26 }
  0x9f   :  { %v106_v19 = vadd.f32 %v104_v18, %v95_v15  ;;  %419 = vrot.lane.b32.xlu0 %v342_v44, %s592_s26 }
  0xa0   :  { %v114_v20 = vpop.permute.xlu1 %113 }
  0xa1   :  { %v112_v21 = vpop.permute.xlu0 %111 }
  0xa2   :  { %v116_v22 = vsel %vm115_vm3, %v112_v21, %v114_v20  ;;  %431 = vrot.lane.b32.xlu1 %v748_v37, %s593_s27 }
  0xa3   :  { %v118_v23 = vadd.f32 %v116_v22, %v106_v19  ;;  %426 = vrot.lane.b32.xlu0 %v769_v42, %s592_s26 }
  0xa4   :  { %v126_v24 = vpop.permute.xlu1 %125 }
  0xa5   :  { %v124_v25 = vpop.permute.xlu0 %123 }
  0xa6   :  { %v127_v41 = vsel %vm115_vm3, %v124_v25, %v126_v24  ;;  %438 = vrot.lane.b32.xlu1 %v738_v35, %s593_s27 }
  0xa7   :  { %v129_v43 = vadd.f32 %v127_v41, %v118_v23  ;;  %433 = vrot.lane.b32.xlu0 %v761_v40, %s593_s27 }
  0xa8   :  { %v137_v39 = vpop.permute.xlu1 %136 }
  0xa9   :  { %v135_v44 = vpop.permute.xlu0 %134 }
  0xaa   :  { %v139_v45 = vsel %vm138_vm4, %v135_v44, %v137_v39  ;;  %445 = vrot.lane.b32.xlu1 %v728_v33, %s594_s28 }
  0xab   :  { %v141_v37 = vadd.f32 %v139_v45, %v129_v43  ;;  %440 = vrot.lane.b32.xlu0 %v751_v38, %s593_s27 }
  0xac   :  { %v149_v42 = vpop.permute.xlu1 %148 }
  0xad   :  { %v147_v46 = vpop.permute.xlu0 %146 }
  0xae   :  { %v150_v47 = vsel %vm138_vm4, %v147_v46, %v149_v42  ;;  %227 = vrot.lane.b32.xlu1 %v641_v6, %s594_s28 }
  0xaf   :  { %v152_v35 = vadd.f32 %v150_v47, %v141_v37  ;;  %447 = vrot.lane.b32.xlu0 %v741_v36, %s594_s28 }
  0xb0   :  { %v160_v40 = vpop.permute.xlu1 %159 }
  0xb1   :  { %v158_v48 = vpop.permute.xlu0 %157 }
  0xb2   :  { %v162_v49 = vsel %vm161_vm5, %v158_v48, %v160_v40  ;;  %454 = vrot.lane.b32.xlu1 %v731_v34, %s594_s28 }
  0xb3   :  { %v164_v33 = vadd.f32 %v162_v49, %v152_v35  ;;  %452 = vrot.lane.b32.xlu0 %v716_v30, %s594_s28  ;;  %v240_v30 = vmul.f32 -0.00059759466, %v626_v2  ;;  %v250_v2 = vmul.f32 -1.226307e-06, %v634_v5 }
  0xb4   :  { %v168_v38 = vpop.permute.xlu1 %167 }
  0xb5   :  { %v166_v50 = vpop.permute.xlu0 %165 }
  0xb6   :  { %v169_v53 = vsel %vm161_vm5, %v166_v50, %v168_v38  ;;  %234 = vrot.lane.b32.xlu1 %v644_v7, %s595_s29  ;;  %v852_v7 = vmul.f32 -0.00059759466, %v707_v28  ;;  %v476_v28 = vmul.f32 -1.226307e-06, %v709_v29 }
  0xb7   :  { %v171_v6 = vadd.f32 %v169_v53, %v164_v33  ;;  %232 = vrot.lane.b32.xlu0 %v632_v4, %s595_s29  ;;  %v466_v4 = vmul.f32 -0.00059759466, %v721_v32  ;;  %v272_v32 = vmul.f32 -1.226307e-06, %v700_v26 }
  0xb8   :  { %v175_v36 = vpop.permute.xlu1 %174 }
  0xb9   :  { %v173_v54 = vpop.permute.xlu0 %172 }
  0xba   :  { %v177_v55 = vsel %vm176_vm6, %v173_v54, %v175_v36  ;;  %461 = vrot.lane.b32.xlu1 %v719_v31, %s595_s29  ;;  %v274_v36 = vadd.f32 %v852_v7, %v272_v32 }
  0xbb   :  { %v179_v56 = vadd.f32 %v177_v55, %v171_v6  ;;  %459 = vrot.lane.b32.xlu0 %v705_v27, %s595_s29 }
  0xbc   :  { %v183_v34 = vpop.permute.xlu1 %182 }
  0xbd   :  { %v181_v57 = vpop.permute.xlu0 %180 }
  0xbe   :  { %v184_v58 = vsel %vm176_vm6, %v181_v57, %v183_v34  ;;  %245 = vrot.lane.b32.xlu1 %v240_v30, %s595_s29 }
  0xbf   :  { %v186_v59 = vadd.f32 %v184_v58, %v179_v56  ;;  %243 = vrot.lane.b32.xlu0 %v789_v51, %s595_s29 }
  0xc0   :  { %v190_v60 = vpop.permute.xlu1 %189 }
  0xc1   :  { %v188_v31 = vpop.permute.xlu0 %187 }
  0xc2   :  { %v192_v27 = vsel %vm191_vm7, %v188_v31, %v190_v60  ;;  %471 = vrot.lane.b32.xlu1 %v466_v4, %s595_s29 }
  0xc3   :  { %v194_v61 = vadd.f32 %v192_v27, %v186_v59  ;;  %469 = vrot.lane.b32.xlu0 %v852_v7, %s595_s29 }
  0xc4   :  { %v198_v62 = vpop.permute.xlu1 %197 }
  0xc5   :  { %v196_v63 = vpop.permute.xlu0 %195 }
  0xc6   :  { %v199_v51 = vsel %vm191_vm7, %v196_v63, %v198_v62  ;;  %255 = vrot.lane.b32.xlu1 %v250_v2, %s596_s30 }
  0xc7   :  { %v201_v0 = vadd.f32 %v199_v51, %v194_v61  ;;  %253 = vrot.lane.b32.xlu0 %v792_v52, %s596_s30 }
  0xc8   :  { %v205_v1 = vpop.permute.xlu1 %204 }
  0xc9   :  { %v203_v3 = vpop.permute.xlu0 %202 }
  0xca   :  { %v207_v8 = vsel %vm206_vm8, %v203_v3, %v205_v1  ;;  %481 = vrot.lane.b32.xlu1 %v476_v28, %s596_s30 }
  0xcb   :  { %v209_v9 = vadd.f32 %v207_v8, %v201_v0  ;;  %479 = vrot.lane.b32.xlu0 %v272_v32, %s596_s30 }
  0xcc   :  { %v213_v5 = vpop.permute.xlu1 %212 }
  0xcd   :  { %v211_v10 = vpop.permute.xlu0 %210 }
  0xce   :  { %v214_v11 = vsel %vm206_vm8, %v211_v10, %v213_v5 }
  0xcf   :  { %v216_v12 = vadd.f32 %v214_v11, %v209_v9 }
  0xd0   :  { %v220_v13 = vpop.permute.xlu1 %219 }
  0xd1   :  { %v218_v52 = vpop.permute.xlu0 %217 }
  0xd2   :  { %v222_v14 = vsel %vm221_vm9, %v218_v52, %v220_v13 }
  0xd3   :  { %v864_v29 = vadd.f32 %v222_v14, %v216_v12 }
  0xd4   :  { %v280_v26 = vpop.permute.xlu1 %279 }
  0xd5   :  { %v866_v15 = vpop.permute.xlu0 %225 }
  0xd8   :  { %v291_v16 = vpop.permute.xlu1 %290 }
  0xd9   :  { %v282_v17 = vpop.permute.xlu0 %281 }
  0xda   :  { %v283_v54 = vsel %vm46_vm0, %v280_v26, %v282_v17 }
  0xdb   :  { %v285_v34 = vadd.f32 %v283_v54, %v274_v36 }
  0xdc   :  { %v302_v18 = vpop.permute.xlu1 %301 }
  0xdd   :  { %v293_v19 = vpop.permute.xlu0 %292 }
  0xde   :  { %v294_v30 = vsel %vm46_vm0, %v291_v16, %v293_v19 }
  0xdf   :  { %v296_v58 = vadd.f32 %v294_v30, %v285_v34 }
  0xe0   :  { %v313_v20 = vpop.permute.xlu1 %312 }
  0xe1   :  { %v304_v21 = vpop.permute.xlu0 %303 }
  0xe2   :  { %v305_v57 = vsel %vm69_vm1, %v302_v18, %v304_v21 }
  0xe3   :  { %v307_v31 = vadd.f32 %v305_v57, %v296_v58 }
  0xe4   :  { %v324_v22 = vpop.permute.xlu1 %323 }
  0xe5   :  { %v315_v23 = vpop.permute.xlu0 %314 }
  0xe6   :  { %v316_v60 = vsel %vm69_vm1, %v313_v20, %v315_v23 }
  0xe7   :  { %v318_v61 = vadd.f32 %v316_v60, %v307_v31 }
  0xe8   :  { %v335_v24 = vpop.permute.xlu1 %334 }
  0xe9   :  { %v326_v25 = vpop.permute.xlu0 %325 }
  0xea   :  { %v327_v27 = vsel %vm92_vm2, %v324_v22, %v326_v25 }
  0xeb   :  { %v329_v63 = vadd.f32 %v327_v27, %v318_v61 }
  0xec   :  { %v346_v41 = vpop.permute.xlu1 %345 }
  0xed   :  { %v337_v43 = vpop.permute.xlu0 %336 }
  0xee   :  { %v338_v62 = vsel %vm92_vm2, %v335_v24, %v337_v43 }
  0xef   :  { %v340_v0 = vadd.f32 %v338_v62, %v329_v63 }
  0xf0   :  { %v357_v39 = vpop.permute.xlu1 %356 }
  0xf1   :  { %v348_v44 = vpop.permute.xlu0 %347 }
  0xf2   :  { %v349_v51 = vsel %vm115_vm3, %v346_v41, %v348_v44 }
  0xf3   :  { %v351_v3 = vadd.f32 %v349_v51, %v340_v0 }
  0xf4   :  { %v368_v45 = vpop.permute.xlu1 %367 }
  0xf5   :  { %v359_v37 = vpop.permute.xlu0 %358 }
  0xf6   :  { %v360_v1 = vsel %vm115_vm3, %v357_v39, %v359_v37 }
  0xf7   :  { %v362_v9 = vadd.f32 %v360_v1, %v351_v3 }
  0xf8   :  { %v379_v42 = vpop.permute.xlu1 %378 }
  0xf9   :  { %v370_v46 = vpop.permute.xlu0 %369 }
  0xfa   :  { %v371_v8 = vsel %vm138_vm4, %v368_v45, %v370_v46 }
  0xfb   :  { %v373_v12 = vadd.f32 %v371_v8, %v362_v9 }
  0xfc   :  { %v390_v47 = vpop.permute.xlu1 %389 }
  0xfd   :  { %v381_v35 = vpop.permute.xlu0 %380 }
  0xfe   :  { %v382_v11 = vsel %vm138_vm4, %v379_v42, %v381_v35 }
  0xff   :  { %v384_v52 = vadd.f32 %v382_v11, %v373_v12 }
 0x100   :  { %v397_v40 = vpop.permute.xlu1 %396 }
 0x101   :  { %v392_v48 = vpop.permute.xlu0 %391 }
 0x102   :  { %v393_v13 = vsel %vm161_vm5, %v390_v47, %v392_v48 }
 0x103   :  { %v395_v17 = vadd.f32 %v393_v13, %v384_v52 }
 0x104   :  { %v404_v49 = vpop.permute.xlu1 %403 }
 0x105   :  { %v399_v33 = vpop.permute.xlu0 %398 }
 0x106   :  { %v400_v16 = vsel %vm161_vm5, %v397_v40, %v399_v33 }
 0x107   :  { %v402_v19 = vadd.f32 %v400_v16, %v395_v17 }
 0x108   :  { %v411_v38 = vpop.permute.xlu1 %410 }
 0x109   :  { %v406_v50 = vpop.permute.xlu0 %405 }
 0x10a   :  { %v407_v18 = vsel %vm176_vm6, %v404_v49, %v406_v50 }
 0x10b   :  { %v409_v23 = vadd.f32 %v407_v18, %v402_v19 }
 0x10c   :  { %v418_v53 = vpop.permute.xlu1 %417 }
 0x10d   :  { %v413_v6 = vpop.permute.xlu0 %412 }
 0x10e   :  { %v414_v22 = vsel %vm176_vm6, %v411_v38, %v413_v6 }
 0x10f   :  { %v416_v25 = vadd.f32 %v414_v22, %v409_v23 }
 0x110   :  { %v425_v55 = vpop.permute.xlu1 %424 }
 0x111   :  { %v420_v56 = vpop.permute.xlu0 %419 }
 0x112   :  { %v421_v24 = vsel %vm191_vm7, %v418_v53, %v420_v56 }
 0x113   :  { %v423_v44 = vadd.f32 %v421_v24, %v416_v25 }
 0x114   :  { %v432_v59 = vpop.permute.xlu1 %431 }
 0x115   :  { %v427_v4 = vpop.permute.xlu0 %426 }
 0x116   :  { %v428_v39 = vsel %vm191_vm7, %v425_v55, %v427_v4 }
 0x117   :  { %v430_v37 = vadd.f32 %v428_v39, %v423_v44 }
 0x118   :  { %v439_v2 = vpop.permute.xlu1 %438 }
 0x119   :  { %v434_v7 = vpop.permute.xlu0 %433 }
 0x11a   :  { %v435_v45 = vsel %vm206_vm8, %v432_v59, %v434_v7 }
 0x11b   :  { %v437_v40 = vadd.f32 %v435_v45, %v430_v37 }
 0x11c   :  { %v446_v28 = vpop.permute.xlu1 %445 }
 0x11d   :  { %v441_v32 = vpop.permute.xlu0 %440 }
 0x11e   :  { %v442_v47 = vsel %vm206_vm8, %v439_v2, %v441_v32 }
 0x11f   :  { %v444_v33 = vadd.f32 %v442_v47, %v437_v40 }
 0x120   :  { %v228_v5 = vpop.permute.xlu1 %227 }
 0x121   :  { %v448_v10 = vpop.permute.xlu0 %447  ;;  %v229_v35 = vsel %vm221_vm9, %v866_v15, %v228_v5 }
 0x122   :  { %v449_v48 = vsel %vm221_vm9, %v446_v28, %v448_v10  ;;  %v231_v38 = vadd.f32 %v229_v35, %v864_v29 }
 0x123   :  { %v451_v54 = vadd.f32 %v449_v48, %v444_v33 }
 0x124   :  { %v455_v14 = vpop.permute.xlu1 %454 }
 0x125   :  { %v453_v26 = vpop.permute.xlu0 %452 }
 0x126   :  { %v456_v6 = vsel %vm221_vm9, %v453_v26, %v455_v14 }
 0x127   :  { %v458_v15 = vadd.f32 %v456_v6, %v451_v54 }
 0x128   :  { %v235_v20 = vpop.permute.xlu1 %234 }
 0x129   :  { %v233_v21 = vpop.permute.xlu0 %232 }
 0x12a   :  { %v237_v49 = vsel %vm236_vm10, %v233_v21, %v235_v20 }
 0x12b   :  { %v239_v55 = vadd.f32 %v237_v49, %v231_v38 }
 0x12c   :  { %v462_v41 = vpop.permute.xlu1 %461 }
 0x12d   :  { %v460_v43 = vpop.permute.xlu0 %459 }
 0x12e   :  { %v463_v56 = vsel %vm236_vm10, %v460_v43, %v462_v41 }
 0x12f   :  { %v465_v29 = vadd.f32 %v463_v56, %v458_v15 }
 0x130   :  { %v246_v42 = vpop.permute.xlu1 %245 }
 0x131   :  { %v244_v46 = vpop.permute.xlu0 %243 }
 0x132   :  { %v247_v36 = vsel %vm236_vm10, %v244_v46, %v246_v42 }
 0x133   :  { %v249_v30 = vadd.f32 %v247_v36, %v239_v55 }
 0x134   :  { %v472_v50 = vpop.permute.xlu1 %471 }
 0x135   :  { %v470_v53 = vpop.permute.xlu0 %469 }
 0x136   :  { %v473_v58 = vsel %vm236_vm10, %v470_v53, %v472_v50 }
 0x137   :  { %v475_v60 = vadd.f32 %v473_v58, %v465_v29 }
 0x138   :  { %v256_v34 = vpop.permute.xlu1 %255 }
 0x139   :  { %v254_v57 = vpop.permute.xlu0 %253 }
 0x13a   :  { %v258_v59 = vsel %vm257_vm11, %v254_v57, %v256_v34 }
 0x13b   :  { %v260_v4 = vadd.f32 %v258_v59, %v249_v30 }
 0x13c   :  { %v482_v31 = vpop.permute.xlu1 %481 }
 0x13d   :  { %261 = vst [vmem:[#allocation5] sm:$0xff] %v260_v4  ;;  %v480_v27 = vpop.permute.xlu0 %479 }
 0x13e   :  { %v483_v61 = vsel %vm257_vm11, %v480_v27, %v482_v31 }
 0x13f   :  { %v485_v2 = vadd.f32 %v483_v61, %v475_v60 }
 0x141   :  { %487 = vst [vmem:[#allocation5 + $0x8] sm:$0xff] %v485_v2 }
 0x142   :  { %567 = shalt.err (!%p564_p12)
}
 0x143   :  { %s568_s7 = scalar_lea.hbm %s911_s1, 256 }
 0x144   :  { %p569_p13 = scmp.ne.s32.totalorder %s911_s1, %s568_s7  ;;  %p572_p0 = scmp.lt.u32.totalorder %s568_s7, %s911_s1 }
 0x146   :  { %p574_p1 = pnand %p572_p0, %p569_p13 }
 0x148   :  { %577 = shalt.err (!%p574_p1)
}
 0x149   :  { %s598_s12 = smov 128   ;;  %s599_s13 = smov 8  }
 0x14a   :  { %499 = dma.vmem_to_hbm [thread:$0]  %s494_s3, 256, %s911_s1, [#allocation4], %s598_s12, %s598_s12, %s599_s13  }
 0x14b   :  { %580 = dma.done.wait [#allocation4], 256  }
 0x14c   :  { %581 = vsyncadd [#allocation4], 4294967040 }
 0x14d   :  { %503 = vsyncpa [#allocation3], 1 }
 0x14e   :  { %504 = vsyncpa [#allocation4], 1 }

</bundles_post_ra>
